<compile_context>
chip_gen: v7x
topology: tpu7x:2x2x1
jax: 0.10.0
libtpu: 0.0.40
codegen_flags: <defaults>
</compile_context>

<pallas_src>
import math

import jax
import jax.numpy as jnp
from jax.experimental import pallas as pl
from jax.experimental.pallas import tpu as pltpu

_LANE = 128
_TARGET_TILE_BYTES = 4 << 20          # ~4 MiB per data block (in+out double-buffered ~16 MiB)
_VMEM_LIMIT_BYTES = 32 * 1024 * 1024  # keep 32 MiB: safe headroom on v7x's 64 MiB VMEM
_MAX_WHOLE_SAMPLE_BYTES = 6 << 20     # budget for the per-sample (unaligned-F) path


def _scale_rows_kernel(scale_ref, x_ref, o_ref):
    # scale_ref: VMEM (tile_r, 1) float32 per-row scale (0 or 1/(1-p))
    # x_ref / o_ref: VMEM (tile_r, 128) lane-dense view of the batch
    o_ref[...] = x_ref[...] * scale_ref[...].astype(x_ref.dtype)


def _scale_sample_kernel(scale_ref, x_ref, o_ref):
    # scale_ref: SMEM (N,) float32; x_ref / o_ref: one whole sample (1, d1, ..., dk)
    b = pl.program_id(0)
    o_ref[...] = x_ref[...] * scale_ref[b].astype(x_ref.dtype)


def _row_tile(total_rows, itemsize):
    # Sublane multiple for the dtype: f32 -> 8, bf16 -> 16, int8 -> 32.
    sub = 8 * max(1, 4 // itemsize)
    target = max(sub, (_TARGET_TILE_BYTES // (_LANE * itemsize)) // sub * sub)
    if total_rows <= target:
        return total_rows, 1            # single full-extent block (exempt from sublane rule)
    return target, pl.cdiv(total_rows, target)


def _drop_rows(x2, scale_rows, n_total, itemsize):
    """Flattened lane-dense path: x2 is (total_rows, 128), scale_rows is (total_rows, 1)."""
    total_rows = x2.shape[0]
    tile_r, n_chunks = _row_tile(total_rows, itemsize)
    cost = pl.CostEstimate(flops=n_total, transcendentals=0,
                           bytes_accessed=2 * n_total * itemsize + 2 * total_rows * 4)
    return pl.pallas_call(
        _scale_rows_kernel,
        out_shape=jax.ShapeDtypeStruct(x2.shape, x2.dtype),
        grid=(n_chunks,),
        in_specs=[pl.BlockSpec((tile_r, 1), lambda c: (c, 0)),
                  pl.BlockSpec((tile_r, _LANE), lambda c: (c, 0))],
        out_specs=pl.BlockSpec((tile_r, _LANE), lambda c: (c, 0)),
        compiler_params=pltpu.CompilerParams(
            dimension_semantics=("parallel",),
            vmem_limit_bytes=_VMEM_LIMIT_BYTES),
        cost_estimate=cost,
    )(scale_rows, x2)


def _drop_whole_samples(x, scale, itemsize):
    """Unaligned-F path: one whole sample per grid step, full trailing block dims."""
    N = x.shape[0]
    ndim = x.ndim
    block_shape = (1,) + x.shape[1:]
    idx = lambda b, s: (b,) + (0,) * (ndim - 1)
    n_total = math.prod(x.shape)
    cost = pl.CostEstimate(flops=n_total, transcendentals=0,
                           bytes_accessed=2 * n_total * itemsize + N * 4)
    return pl.pallas_call(
        _scale_sample_kernel,
        out_shape=jax.ShapeDtypeStruct(x.shape, x.dtype),
        grid_spec=pltpu.PrefetchScalarGridSpec(
            num_scalar_prefetch=1,                      # scale -> SMEM
            grid=(N,),
            in_specs=[pl.BlockSpec(block_shape, idx)],
            out_specs=pl.BlockSpec(block_shape, idx)),
        compiler_params=pltpu.CompilerParams(
            dimension_semantics=("parallel",),
            vmem_limit_bytes=_VMEM_LIMIT_BYTES),
        cost_estimate=cost,
    )(scale, x)


def drop_sample(x, key, p=0.0, training=True):
    """JAX/Pallas equivalent of DropSample.forward (batch-first, any rank >= 2)."""
    if (not p) or (not training):
        return x

    orig_shape = x.shape
    N = orig_shape[0]
    F = math.prod(orig_shape[1:])
    itemsize = jnp.dtype(x.dtype).itemsize

    # Per-sample scale keep/(1-p): one uniform draw per sample (p < u keeps the
    # sample), matching the PyTorch module. Glue math once here; the kernel hot
    # path is a single broadcast multiply.
    u = jax.random.uniform(key, (N,), dtype=jnp.float32)
    inv_keep = jnp.float32(1.0) / jnp.float32(1.0 - p)
    scale = jnp.where(u > jnp.float32(p), inv_keep, jnp.float32(0.0))

    # TODO(synk): for large p, skip the HBM read of dropped samples entirely
    # (memory_space=pl.ANY + make_async_copy guarded by @pl.when(scale != 0)).

    if F % _LANE == 0:
        # Fast path: lane-dense (N*F/128, 128) view of the whole batch (pure
        # bitcast, no copy). Row-chunk grid gives full-size tiles regardless of
        # per-sample size and balances v7x's two TensorCores.
        rows_per_sample = F // _LANE
        x2 = x.reshape(N * rows_per_sample, _LANE)
        scale_rows = jnp.repeat(scale, rows_per_sample)[:, None]   # (total_rows, 1) f32
        out = _drop_rows(x2, scale_rows, N * F, itemsize)
        return out.reshape(orig_shape)

    if x.ndim >= 3 and F * itemsize <= _MAX_WHOLE_SAMPLE_BYTES:
        # Unaligned feature count: block over the full trailing dims (exempt
        # from the (8,128) rule) -- no padding copy, no post-kernel slice.
        return _drop_whole_samples(x, scale, itemsize)

    # Rare fallback (unaligned AND huge samples, or rank-2 input): pad the
    # flattened features to a lane multiple only, run the row path, slice back.
    f_pad = pl.cdiv(F, _LANE) * _LANE
    rows_per_sample = f_pad // _LANE
    x_flat = jnp.pad(x.reshape(N, F), ((0, 0), (0, f_pad - F)))
    scale_rows = jnp.repeat(scale, rows_per_sample)[:, None]
    out = _drop_rows(x_flat.reshape(N * rows_per_sample, _LANE),
                     scale_rows, N * f_pad, itemsize)
    return out.reshape(N, f_pad)[:, :F].reshape(orig_shape)


def _drop_sample_ref(x, key, p):
    """Pure-JAX reference (same RNG draws and scale math)."""
    u = jax.random.uniform(key, (x.shape[0],), dtype=jnp.float32)
    inv_keep = jnp.float32(1.0) / jnp.float32(1.0 - p)
    scale = jnp.where(u > jnp.float32(p), inv_keep, jnp.float32(0.0))
    return x * scale.astype(x.dtype).reshape((-1,) + (1,) * (x.ndim - 1))


if __name__ == "__main__":
    key = jax.random.PRNGKey(0)
    kx, ku = jax.random.split(key)
    p = 0.3

    # Lane-aligned features (F = 4*16*16 = 1024): flattened-row fast path.
    x = jax.random.normal(kx, (2, 4, 16, 16), dtype=jnp.float32)
    out = jax.block_until_ready(drop_sample(x, ku, p=p, training=True))
    assert out.shape == x.shape and out.dtype == x.dtype
    assert jnp.allclose(out, _drop_sample_ref(x, ku, p), atol=1e-6, rtol=1e-6)

    # eval / p=0 paths return the input unchanged.
    assert jnp.array_equal(drop_sample(x, ku, p=p, training=False), x)
    assert jnp.array_equal(drop_sample(x, ku, p=0.0, training=True), x)

    # Unaligned feature count (5*7*11 = 385): whole-sample path, no padding copy.
    x2 = jax.random.normal(kx, (3, 5, 7, 11), dtype=jnp.float32)
    out2 = jax.block_until_ready(drop_sample(x2, ku, p=p, training=True))
    assert jnp.allclose(out2, _drop_sample_ref(x2, ku, p), atol=1e-6, rtol=1e-6)

    # Multi-chunk grid + masked edge block (total_rows = 12288, tile_r = 8192).
    x3 = jax.random.normal(kx, (12, 32, 64, 64), dtype=jnp.float32)
    out3 = jax.block_until_ready(drop_sample(x3, ku, p=p, training=True))
    assert jnp.allclose(out3, _drop_sample_ref(x3, ku, p), atol=1e-6, rtol=1e-6)

    # bf16 exercises the (16, 128) sublane multiple and the f32->bf16 scale cast.
    xb = jax.random.normal(kx, (4, 8, 16, 16), dtype=jnp.bfloat16)
    outb = jax.block_until_ready(drop_sample(xb, ku, p=p, training=True))
    assert jnp.allclose(outb.astype(jnp.float32),
                        _drop_sample_ref(xb, ku, p).astype(jnp.float32),
                        atol=1e-2, rtol=1e-2)

    print("KERNEL_OK")
</pallas_src>

<mosaic_0001>
module attributes {stable_mosaic.version = 11 : i64} {
  func.func @_scale_rows_kernel(%arg0: i32, %arg1: memref<16x1xf32, #tpu.memory_space<vmem>>, %arg2: memref<16x128xf32, #tpu.memory_space<vmem>>, %arg3: memref<16x128xf32, #tpu.memory_space<vmem>>) attributes {dimension_semantics = [#tpu.dimension_semantics<parallel>], iteration_bounds = array<i64: 1>, scalar_prefetch = 0 : i64, scratch_operands = 0 : i64, tpu.core_type = #tpu.core_type<tc>, window_params = [{transform_indices = @transform_0, window_bounds = array<i64: 16, 1>}, {transform_indices = @transform_1, window_bounds = array<i64: 16, 128>}, {transform_indices = @transform_2, window_bounds = array<i64: 16, 128>}]} {
    %c0 = arith.constant 0 : index
    %c0_0 = arith.constant 0 : index
    %0 = vector.load %arg2[%c0, %c0_0] : memref<16x128xf32, #tpu.memory_space<vmem>>, vector<16x128xf32>
    %c0_1 = arith.constant 0 : index
    %c0_2 = arith.constant 0 : index
    %1 = vector.load %arg1[%c0_1, %c0_2] : memref<16x1xf32, #tpu.memory_space<vmem>>, vector<16x1xf32>
    %2 = vector.broadcast %1 : vector<16x1xf32> to vector<16x128xf32>
    %3 = arith.mulf %0, %2 : vector<16x128xf32>
    %c0_3 = arith.constant 0 : index
    %c0_4 = arith.constant 0 : index
    %4 = vector.load %arg3[%c0_3, %c0_4] : memref<16x128xf32, #tpu.memory_space<vmem>>, vector<16x128xf32>
    tpu.vector_store %arg3[%c0_3, %c0_4], %3 {strides = array<i32>} : memref<16x128xf32, #tpu.memory_space<vmem>>, vector<16x128xf32>,
    return
  }
  func.func @transform_0(%arg0: i32) -> (i32, i32) {
    %c0_i32 = arith.constant 0 : i32
    %c0_i32_0 = arith.constant 0 : i32
    return %arg0, %c0_i32 : i32, i32
  }
  func.func @transform_1(%arg0: i32) -> (i32, i32) {
    %c0_i32 = arith.constant 0 : i32
    %c0_i32_0 = arith.constant 0 : i32
    return %arg0, %c0_i32 : i32, i32
  }
  func.func @transform_2(%arg0: i32) -> (i32, i32) {
    %c0_i32 = arith.constant 0 : i32
    %c0_i32_0 = arith.constant 0 : i32
    return %arg0, %c0_i32 : i32, i32
  }
}

</mosaic_0001>

<bundles_post_ra>
// kernel: tpu_custom_call.1
= control target key start
LH: loop header
LB: loop body
LE: loop exit
PB: predicated region body
PF: predicated region fallthrough
CT: control target
= control target key end

     0   :  { %s118_s0 = inlined_call_operand.vmem [shape: f32[16,1], index: 0, kind: input, shape index: {}]   ;;  %s119_s1 = inlined_call_operand.vmem [shape: f32[16,128], index: 1, kind: input, shape index: {}]   ;;  %s120_s2 = inlined_call_operand.hbm [shape: f32[16,128], index: 2, kind: output, shape index: {}]  }
   0x1   :  { %v14_v0 = vld [vmem:[%s118_s0] sm:$0xff] }
   0x2   :  { %7 = vsyncpa [#allocation3], 0  ;;  %v75_v1 = vmov 0   ;;  %v15_v2 = vld [vmem:[%s118_s0 + $0x8] sm:$0xff]  ;;  %v12_v3 = vld [vmem:[%s119_s1] sm:$0xff]  ;;  %s76_s15 = smov [#allocation2]  }
   0x3   :  { %50 = vset.pattern.permute.xlu0 %v75_v1  ;;  %s35_s16 = sshll.u32 %s76_s15, 4  ;;  %v13_v6 = vld [vmem:[%s119_s1 + $0x8] sm:$0xff]  ;;  %s36_s16 = int_to_ptr.vmem [resolvable:$true] %s35_s16 }
   0x4   :  { %18 = vperm.xlu0 %50, %v14_v0   ;;  %s51_s19 = scalar_lea.vmem %s36_s16, 256  ;;  %p56_p1 = scmp.lt.s32.totalorder %s36_s16, %s36_s16 }
   0x5   :  { %p52_p0 = scmp.ne.s32.totalorder %s36_s16, %s51_s19  ;;  %p57_p2 = scmp.lt.s32.totalorder %s51_s19, %s51_s19 }
   0x7   :  { %p58_p3 = por %p57_p2, %p56_p1 }
   0x8   :  { %23 = vperm.xlu0 %50, %v15_v2  }
   0x9   :  { %p59_p4 = pnand %p58_p3, %p52_p0 }
  0x83   :  { %v19_v4 = vpop.permute.xlu0 %18 }
  0x84   :  { %v26_v5 = vmul.f32 %v19_v4, %v12_v3 }
  0x86   :  { %28 = vst [vmem:[#allocation2] sm:$0xff] %v26_v5 }
  0x87   :  { %v24_v7 = vpop.permute.xlu0 %23 }
  0x88   :  { %v27_v8 = vmul.f32 %v24_v7, %v13_v6 }
  0x8a   :  { %29 = vst [vmem:[#allocation2 + $0x8] sm:$0xff] %v27_v8 }
  0x8b   :  { %62 = shalt.err (!%p59_p4)
}
  0x8c   :  { %s63_s21 = scalar_lea.hbm %s120_s2, 256 }
  0x8d   :  { %p64_p5 = scmp.ne.s32.totalorder %s120_s2, %s63_s21  ;;  %p67_p6 = scmp.lt.u32.totalorder %s63_s21, %s120_s2 }
  0x8f   :  { %p69_p7 = pnand %p67_p6, %p64_p5 }
  0x91   :  { %72 = shalt.err (!%p69_p7)
}
  0x92   :  { %s77_s25 = smov 128   ;;  %s78_s26 = smov 8  }
  0x93   :  { %41 = dma.vmem_to_hbm [thread:$0]  %s36_s16, 256, %s120_s2, [#allocation3], %s77_s25, %s77_s25, %s78_s26  }
  0x94   :  { %73 = dma.done.wait [#allocation3], 256  }
  0x95   :  { %74 = vsyncadd [#allocation3], 4294967040 }
  0x96   :  { %45 = vsyncpa [#allocation3], 1 }

</bundles_post_ra>
